<compile_context>
chip_gen: v7x
topology: tpu7x:2x2x1
jax: 0.10.0
libtpu: 0.0.40
codegen_flags: <defaults>
</compile_context>

<pallas_src>
import jax
import jax.numpy as jnp
from jax.experimental import pallas as pl
from jax.experimental.pallas import tpu as pltpu


def commnet_kernel(x_ref, w_ref, b_ref, out_ref):
    # x_ref  : VMEM (TB, K)     streamed batch tile (bf16), K = A*obs (lane-dense)
    # w_ref  : VMEM (K, Npad)   resident kron'd weight (bf16), Npad multiple of 128
    # b_ref  : VMEM (1, Npad)   resident folded bias (f32)
    # out_ref: VMEM (TB, Npad)  bf16, unmasked full-vreg stores
    acc = jnp.dot(x_ref[...], w_ref[...], preferred_element_type=jnp.float32)
    out_ref[...] = (acc + b_ref[...]).astype(out_ref.dtype)


def fold_params(w_enc, b_enc, w_act, b_act, hi, ci, num_agents,
                *, lane=128, param_dtype=jnp.bfloat16):
    """Host-side, once per parameter update (outside the step loop).
    w_enc: (H, obs), b_enc: (H,), w_act: (nact, H), b_act: (nact,)  [nn.Linear layout].
    Returns (w_big, b_big): w_big (A*obs, Npad), b_big (1, Npad), Npad = ceil(A*nact/128)*128."""
    assert num_agents > 1, "comm matrix divides by (num_agents - 1)"
    w_eff = (w_enc.T @ w_act.T).astype(jnp.float32)                  # (obs, nact)
    off = ci / (num_agents - 1)
    eye = jnp.eye(num_agents, dtype=jnp.float32)
    M = jnp.full((num_agents, num_agents), off, jnp.float32) + (hi - off) * eye
    # Row-major flattening: out_flat = x_flat @ kron(M^T, W_eff).  (M is symmetric.)
    w_big = jnp.kron(M.T, w_eff)                                     # (A*obs, A*nact)
    b_eff = (hi + ci) * (b_enc @ w_act.T) + b_act                    # (nact,)
    b_big = jnp.tile(b_eff, num_agents)                              # (A*nact,)
    n = w_big.shape[1]
    n_pad = (n + lane - 1) // lane * lane
    if n_pad != n:                                                   # pad to 128-lane output
        w_big = jnp.pad(w_big, ((0, 0), (0, n_pad - n)))
        b_big = jnp.pad(b_big, (0, n_pad - n))
    return w_big.astype(param_dtype), b_big.reshape(1, n_pad).astype(jnp.float32)


def commnet_forward(x, w_big, b_big, num_agents, num_actions,
                    *, block_b=None, out_dtype=jnp.bfloat16):
    """x: (B, A, obs).  w_big: (A*obs, Npad).  b_big: (1, Npad).
    Returns (B, A, num_actions) in out_dtype."""
    B, A, obs = x.shape
    K = A * obs
    n_pad = w_big.shape[1]
    assert w_big.shape[0] == K

    # bf16 streaming of the dominant x stream; reshape to (B, K) is free at HBM level.
    x2 = x.reshape(B, K).astype(w_big.dtype)

    if block_b is None:
        # Target ~2 MiB x tiles (measured sweet spot for HBM roofline).
        bytes_per_row = K * x2.dtype.itemsize
        block_b = max(8, min(B, (2 << 20) // max(1, bytes_per_row)))
    block_b = min(block_b, B)
    if block_b % 8:                       # sublane alignment for the (8,128) constraint
        block_b = (block_b + 7) // 8 * 8
    n_blocks = pl.cdiv(B, block_b)
    B_pad = n_blocks * block_b
    if B_pad != B:                        # ragged batch -> pad (padded rows discarded below)
        x2 = jnp.pad(x2, ((0, B_pad - B), (0, 0)))

    out = pl.pallas_call(
        commnet_kernel,
        out_shape=jax.ShapeDtypeStruct((B_pad, n_pad), out_dtype),
        grid=(n_blocks,),
        in_specs=[
            pl.BlockSpec((block_b, K), lambda i: (i, 0)),   # streamed x tile
            pl.BlockSpec((K, n_pad), lambda i: (0, 0)),     # resident kron'd weight
            pl.BlockSpec((1, n_pad), lambda i: (0, 0)),     # resident bias
        ],
        out_specs=pl.BlockSpec((block_b, n_pad), lambda i: (i, 0)),
        compiler_params=pltpu.CompilerParams(
            dimension_semantics=("parallel",)),             # megacore / 2-TC split on v7x
    )(x2, w_big, b_big)

    return out[:B, : A * num_actions].reshape(B, A, num_actions)


def reference_forward(x, w_enc, b_enc, w_act, b_act, hi, ci):
    """Literal f32 translation of the PyTorch module (explicit comm matrix, two Linears)."""
    A = x.shape[1]
    off = ci / (A - 1)
    eye = jnp.eye(A, dtype=jnp.float32)
    M = jnp.full((A, A), off, dtype=jnp.float32) - off * eye + hi * eye
    enc = x @ w_enc.T + b_enc                           # (B, A, H)
    comm = jnp.einsum("ij,bjh->bih", M, enc)            # (B, A, H)
    return comm @ w_act.T + b_act                       # (B, A, nact)


if __name__ == "__main__":
    # Small shapes consistent with the module; batch = environments/timesteps stacked.
    num_agents = 8
    obs_dim = 16
    hidden = 32
    num_actions = 8
    batch = 64

    key = jax.random.PRNGKey(0)
    k_x, k_we, k_be, k_wa, k_ba = jax.random.split(key, 5)

    # nn.Linear-shaped parameters.
    w_enc = jax.random.normal(k_we, (hidden, obs_dim), jnp.float32) / jnp.sqrt(obs_dim)
    b_enc = jax.random.normal(k_be, (hidden,), jnp.float32) * 0.01
    w_act = jax.random.normal(k_wa, (num_actions, hidden), jnp.float32) / jnp.sqrt(hidden)
    b_act = jax.random.normal(k_ba, (num_actions,), jnp.float32) * 0.01

    # hi, ci are uninitialized learnable Variables in the original module; pick values.
    hi = jnp.float32(1.0)
    ci = jnp.float32(0.5)

    x = jax.random.normal(k_x, (batch, num_agents, obs_dim), jnp.float32)

    w_big, b_big = fold_params(w_enc, b_enc, w_act, b_act, hi, ci, num_agents)

    # grid=2: both v7x TensorCores get a tile; extra step overhead is noise on v5e/v6e.
    out = commnet_forward(x, w_big, b_big, num_agents, num_actions, block_b=batch // 2)
    out = jax.block_until_ready(out)

    ref = reference_forward(x, w_enc, b_enc, w_act, b_act, hi, ci)
    assert out.shape == (batch, num_agents, num_actions)
    # bf16 streaming + fold changes rounding order vs the f32 two-Linear reference.
    assert jnp.allclose(out.astype(jnp.float32), ref, atol=1e-1, rtol=5e-2), "mismatch vs reference"

    print("KERNEL_OK")
</pallas_src>

<mosaic_0001>
module attributes {stable_mosaic.version = 11 : i64} {
  func.func @commnet_kernel(%arg0: i32, %arg1: memref<32x128xbf16, #tpu.memory_space<vmem>>, %arg2: memref<128x128xbf16, #tpu.memory_space<vmem>>, %arg3: memref<1x128xf32, #tpu.memory_space<vmem>>, %arg4: memref<32x128xbf16, #tpu.memory_space<vmem>>) attributes {dimension_semantics = [#tpu.dimension_semantics<parallel>], iteration_bounds = array<i64: 2>, scalar_prefetch = 0 : i64, scratch_operands = 0 : i64, tpu.core_type = #tpu.core_type<tc>, window_params = [{transform_indices = @transform_0, window_bounds = array<i64: 32, 128>}, {pipeline_mode = #tpu.pipeline_mode<synchronous>, transform_indices = @transform_1, window_bounds = array<i64: 128, 128>}, {pipeline_mode = #tpu.pipeline_mode<synchronous>, transform_indices = @transform_2, window_bounds = array<i64: 1, 128>}, {transform_indices = @transform_3, window_bounds = array<i64: 32, 128>}]} {
    %c0 = arith.constant 0 : index
    %c0_0 = arith.constant 0 : index
    %0 = vector.load %arg1[%c0, %c0_0] : memref<32x128xbf16, #tpu.memory_space<vmem>>, vector<32x128xbf16>
    %c0_1 = arith.constant 0 : index
    %c0_2 = arith.constant 0 : index
    %1 = vector.load %arg2[%c0_1, %c0_2] : memref<128x128xbf16, #tpu.memory_space<vmem>>, vector<128x128xbf16>
    %cst = arith.constant dense<0.000000e+00> : vector<32x128xf32>
    %2 = tpu.matmul %0, %1, %cst {dimension_numbers = #tpu.dot_dimension_numbers<[1], [0], [0], [1], [0, 0, 1, 1], [], []>} : vector<32x128xbf16>, vector<128x128xbf16>, vector<32x128xf32> -> vector<32x128xf32>
    %c0_3 = arith.constant 0 : index
    %c0_4 = arith.constant 0 : index
    %3 = vector.load %arg3[%c0_3, %c0_4] : memref<1x128xf32, #tpu.memory_space<vmem>>, vector<1x128xf32>
    %4 = vector.broadcast %3 : vector<1x128xf32> to vector<32x128xf32>
    %5 = arith.addf %2, %4 : vector<32x128xf32>
    %6 = arith.truncf %5 : vector<32x128xf32> to vector<32x128xbf16>
    %c0_5 = arith.constant 0 : index
    %c0_6 = arith.constant 0 : index
    %7 = vector.load %arg4[%c0_5, %c0_6] : memref<32x128xbf16, #tpu.memory_space<vmem>>, vector<32x128xbf16>
    tpu.vector_store %arg4[%c0_5, %c0_6], %6 {strides = array<i32>} : memref<32x128xbf16, #tpu.memory_space<vmem>>, vector<32x128xbf16>,
    return
  }
  func.func @transform_0(%arg0: i32) -> (i32, i32) {
    %c0_i32 = arith.constant 0 : i32
    %c0_i32_0 = arith.constant 0 : i32
    return %arg0, %c0_i32 : i32, i32
  }
  func.func @transform_1(%arg0: i32) -> (i32, i32) {
    %c0_i32 = arith.constant 0 : i32
    %c0_i32_0 = arith.constant 0 : i32
    %c0_i32_1 = arith.constant 0 : i32
    return %c0_i32, %c0_i32_0 : i32, i32
  }
  func.func @transform_2(%arg0: i32) -> (i32, i32) {
    %c0_i32 = arith.constant 0 : i32
    %c0_i32_0 = arith.constant 0 : i32
    %c0_i32_1 = arith.constant 0 : i32
    return %c0_i32, %c0_i32_0 : i32, i32
  }
  func.func @transform_3(%arg0: i32) -> (i32, i32) {
    %c0_i32 = arith.constant 0 : i32
    %c0_i32_0 = arith.constant 0 : i32
    return %arg0, %c0_i32 : i32, i32
  }
}

</mosaic_0001>

<bundles_post_ra>
// kernel: tpu_custom_call.1
= control target key start
LH: loop header
LB: loop body
LE: loop exit
PB: predicated region body
PF: predicated region fallthrough
CT: control target
= control target key end

     0   :  { %8 = vsyncpa [#allocation3], 0  ;;  %s980_s0 = inlined_call_operand.hbm [shape: bf16[64,128], index: 0, kind: input, shape index: {}]   ;;  %s981_s1 = inlined_call_operand.hbm [shape: bf16[128,128], index: 1, kind: input, shape index: {}]   ;;  %s982_s2 = inlined_call_operand.vmem [shape: f32[1,128], index: 2, kind: input, shape index: {}]   ;;  %s983_s3 = inlined_call_operand.hbm [shape: bf16[64,128], index: 3, kind: output, shape index: {}]  }
   0x1   :  { %10 = vsyncpa [#allocation3 + $0x1], 0 }
   0x2   :  { %11 = vsyncpa [#allocation6], 0 }
   0x3   :  { %12 = vsyncpa [#allocation4], 0 }
   0x4   :  { %14 = vsyncpa [#allocation4 + $0x1], 0  ;;  %s766_s12 = smov 0   ;;  %s768_s13 = smov 0  }
   0x5   :  { %s770_s14 = smov 0   ;;  %s772_s15 = smov 0  }
   0x6 LB: > { %s787_s16 = sadd.s32 4294967295, %s737_s15   ;;  %s460_s17 = sadd.s32 4294967294, %s737_s15   ;;  %s737_s15 = sphi %s772_s15, %s1003_s15   ;;  %s733_s14 = sphi %s770_s14, %s1002_s14   ;;  %s729_s13 = sphi %s768_s13, %s1001_s13   ;;  %s725_s12 = sphi %s766_s12, %s1000_s12  }
   0x7   : > { %p40_p0 = scmp.ne.s32.totalorder %s729_s13, %s725_s12  ;;  %p984_p1 = scmp.eq.s32.totalorder %s787_s16, 0 }
   0x8   : > { %p112_p3 = scmp.eq.s32.totalorder %s460_s17, 1  ;;  %p461_p5 = scmp.ge.s32.totalorder %s737_s15, 1 }
   0x9   : > { %p796_p4 = por %p984_p1, %p40_p0  ;;  %p119_p7 = scmp.lt.s32.totalorder %s737_s15, 3 }
   0xa   : > { %p801_p6 = por %p112_p3, %p40_p0  ;;  %s739_s21 = smov [#allocation5]  }
   0xb   : > { %s987_s18 = scalar_select %p796_p4, 1, 0 }
   0xc   : > { %s988_s19 = scalar_select %p801_p6, 1, 0 }
   0xd   : > { %p806_p8 = pnand %p461_p5, %p119_p7  ;;  %s131_s22 = sshll.u32 %s739_s21, 4  ;;  %s810_s22 = int_to_ptr.vmem [resolvable:$true] %s131_s22 }
   0xe   : > { %s822_s24 = sadd.s32 1, %s737_s15   ;;  %s27_s25 = sadd.s32 1, %s733_s14 }
   0xf   : > { %s989_s20 = scalar_select %p806_p8, 1, 0 }
  0x10   : > { %p546_p9 = pneg %p806_p8  ;;  %s24_s26 = ssub.s32 %s737_s15, %s822_s24 }
  0x11   : > { %s609_s29 = scalar_lea.hbm %s981_s1, 1024 }
  0x12   : > { %p817_p11 = pnand %p546_p9, %p984_p1  ;;  %p610_p12 = scmp.ne.s32.totalorder %s981_s1, %s609_s29 }
  0x13   : > { %p616_p5 = scmp.lt.u32.totalorder %s609_s29, %s981_s1 }
  0x14   : > { %p611_p13 = pneg %p817_p11 }
  0x16   : > { %p612_p0 = pnand %p611_p13, %p610_p12 }
  0x18   : > { %p613_p3 = pneg %p612_p0 }
  0x1a   : > { %p618_p7 = pnand %p616_p5, %p613_p3 }
  0x1c   : > { %621 = shalt.err (!%p618_p7)
}
  0x1d   : > { %s622_s7 = scalar_lea.vmem %s810_s22, 1024  ;;  %p630_p2 = scmp.lt.s32.totalorder %s810_s22, %s810_s22 }
  0x1e   : > { %p623_p9 = scmp.ne.s32.totalorder %s810_s22, %s622_s7  ;;  %p631_p6 = scmp.lt.s32.totalorder %s622_s7, %s622_s7 }
  0x20   : > { %p625_p10 = pnand %p623_p9, %p611_p13  ;;  %p632_p4 = por %p631_p6, %p630_p2 }
  0x22   : > { %p626_p1 = pneg %p625_p10 }
  0x24   : > { %p633_p8 = pnand %p632_p4, %p626_p1 }
  0x26   : > { %636 = shalt.err (!%p633_p8)
}
  0x27   : > { %s740_s8 = smov 64   ;;  %s741_s9 = smov 4  }
  0x28   : > { %549 = dma.hbm_to_vmem [thread:$0]  (!%p817_p11), %s981_s1, 1024, %s810_s22, [#allocation6], %s740_s8, %s740_s8, %s741_s9  }
  0x29   : > { %p25_p1 = scmp.eq.s32.totalorder %s24_s26, 0  ;;  %p34_p2 = scmp.ne.s32.totalorder %s733_s14, %s729_s13 }
  0x2a   : > { %p35_p4 = scmp.eq.s32.totalorder %s737_s15, 0  ;;  %p559_p6 = scmp.lt.s32.totalorder %s737_s15, 2 }
  0x2b   : > { %s856_s17 = scalar_select %p25_p1, %s733_s14, %s27_s25  }
  0x2c   : > { %p36_p8 = por %p35_p4, %p34_p2  ;;  %p991_p10 = scmp.eq.s32.totalorder %s787_s16, 1 }
  0x2d   : > { %s148_s23 = sand.u32 1, %s733_s14   ;;  %s491_s27 = sshll.u32 %s737_s15, 8 }
  0x2e   : > { %p860_p12 = por %p991_p10, %p34_p2  ;;  %s464_s28 = sshll.u32 %s148_s23, 4 }
  0x2f   : > { %s869_s4 = scalar_lea.hbm %s980_s0, %s491_s27  ;;  %s152_s22 = scalar_lea.vmem [#allocation2], %s464_s28 }
  0x30   : > { %s159_s25 = sshll.u32 %s152_s22, 4  ;;  %p871_p11 = pnand %p559_p6, %p36_p8  ;;  %s875_s25 = int_to_ptr.vmem [resolvable:$true] %s159_s25 }
  0x31   : > { %s877_s5 = scalar_lea.sflag [#allocation3], %s148_s23  ;;  %s637_s6 = scalar_lea.hbm %s869_s4, 256 }
  0x32   : > { %p638_p13 = scmp.ne.s32.totalorder %s869_s4, %s637_s6  ;;  %p639_p0 = pneg %p871_p11 }
  0x33   : > { %s642_s11 = scalar_lea.hbm %s980_s0, 512  ;;  %p643_p7 = scmp.lt.u32.totalorder %s869_s4, %s980_s0 }
  0x34   : > { %p640_p3 = pnand %p639_p0, %p638_p13  ;;  %p644_p9 = scmp.lt.u32.totalorder %s642_s11, %s637_s6 }
  0x35   : > { %p646_p2 = scmp.lt.u32.totalorder %s637_s6, %s869_s4 }
  0x36   : > { %p641_p5 = pneg %p640_p3  ;;  %p645_p1 = por %p644_p9, %p643_p7 }
  0x38   : > { %p647_p4 = por %p646_p2, %p645_p1 }
  0x3a   : > { %p648_p6 = pnand %p647_p4, %p641_p5 }
  0x3c   : > { %651 = shalt.err (!%p648_p6)
}
  0x3d   : > { %s652_s23 = scalar_lea.vmem %s875_s25, 256  ;;  %s742_s29 = smov [#allocation2]  }
  0x3e   : > { %p653_p8 = scmp.ne.s32.totalorder %s875_s25, %s652_s23  ;;  %s657_s30 = sshll.u32 %s742_s29, 4  ;;  %s658_s30 = int_to_ptr.vmem [resolvable:$false] %s657_s30 }
  0x3f   : > { %s659_s22 = scalar_lea.vmem %s658_s30, 512  ;;  %p660_p3 = scmp.lt.s32.totalorder %s875_s25, %s658_s30 }
  0x40   : > { %p655_p10 = pnand %p653_p8, %p639_p0  ;;  %p661_p7 = scmp.lt.s32.totalorder %s659_s22, %s652_s23 }
  0x42   : > { %p656_p13 = pneg %p655_p10  ;;  %p662_p9 = por %p661_p7, %p660_p3 }
  0x44   : > { %p663_p1 = pnand %p662_p9, %p656_p13 }
  0x46   : > { %666 = shalt.err (!%p663_p1)
}
  0x47   : > { %553 = dma.hbm_to_vmem [thread:$0]  (!%p871_p11), %s869_s4, 256, %s875_s25, %s877_s5, %s740_s8, %s740_s8, %s741_s9  }
  0x48   : > { %p994_p0 = scmp.ne.s32.totalorder %s989_s20, 0 }
  0x49   : > { %s911_s6 = sand.u32 (!%p994_p0), 1, %s729_s13   ;;  %p995_p5 = scmp.ne.s32.totalorder (!%p994_p0), %s987_s18, 0 }
  0x4a   : > { %171 = sbr.rel (%p994_p0) target bundleno = 352 (0x160), region = 32  ;;  %s468_s7 = sshll.u32 (!%p994_p0), %s911_s6, 4 }
  0x4b   : > { %s174_s10 = scalar_lea.sflag (!%p994_p0), [#allocation3], %s911_s6  ;;  %s177_s26 = scalar_lea.vmem (!%p994_p0), [#allocation2], %s468_s7 }
  0x51   : > { %712 = dma.done.wait (%p995_p5), %s174_s10, 256  }
  0x52   : > { %714 = vsyncadd (%p995_p5), %s174_s10, 4294967040  ;;  %p996_p11 = scmp.eq.s32.totalorder %s787_s16, 0 }
  0x54   : > { %716 = dma.done.wait (%p996_p11), [#allocation6], 1024   ;;  %p997_p2 = pmov %p996_p11 }
  0x55   : > { %v599_v0 = vld [vmem:[#allocation5] sm:$0xff]   ;;  %v600_v1 = vld [vmem:[#allocation5 + $0x8] sm:$0xff]   ;;  %v601_v2 = vld [vmem:[#allocation5 + $0x10] sm:$0xff]   ;;  %s203_s8 = scalar_lea.vmem [#allocation7], %s468_s7  ;;  %s496_s4 = sshll.u32 %s787_s16, 8 }
  0x56   : > { %718 = vsyncadd (%p997_p2), [#allocation6], 4294966272  ;;  %518 = vmatprep.subr.bf16.mxu0 %v599_v0  ;;  %v602_v3 = vld [vmem:[#allocation5 + $0x18] sm:$0xff]   ;;  %v607_v4 = vld [vmem:[%s177_s26] sm:$0xff]   ;;  %s377_s9 = sshll.u32 %s203_s8, 4  ;;  %s936_s11 = scalar_lea.hbm %s983_s3, %s496_s4  ;;  %s931_s9 = int_to_ptr.vmem [resolvable:$true] %s377_s9 }
  0x57   : > { %519 = vmatpush3.bf16.msra.mxu0 %v599_v0  ;;  %534 = vmatprep.mubr.bf16.mxu0 %v607_v4  ;;  %v603_v5 = vld [vmem:[#allocation5 + $0x20] sm:$0xff]   ;;  %v604_v6 = vld [vmem:[#allocation5 + $0x28] sm:$0xff]   ;;  %v605_v7 = vld [vmem:[#allocation5 + $0x30] sm:$0xff]   ;;  %s364_s16 = scalar_lea.sflag [#allocation4], %s911_s6  ;;  %s667_s27 = scalar_lea.vmem %s931_s9, 256 }
  0x58   : > { %520 = vmatprep.subr.bf16.mxu0 %v600_v1  ;;  %v606_v8 = vld [vmem:[#allocation5 + $0x38] sm:$0xff]   ;;  %v471_v11 = vld [vmem:[%s982_s2] ss:$0 sm:$0xff]  ;;  %p668_p4 = scmp.ne.s32.totalorder %s931_s9, %s667_s27  ;;  %s743_s28 = smov [#allocation7]  }
  0x59   : > { %v608_v9 = vld [vmem:[%s177_s26 + $0x8] sm:$0xff]   ;;  %s671_s23 = sshll.u32 %s743_s28, 4  ;;  %s672_s23 = int_to_ptr.vmem [resolvable:$false] %s671_s23 }
  0x5a   : > { %p669_p6 = pnand %p668_p4, %p860_p12  ;;  %s673_s29 = scalar_lea.vmem %s672_s23, 512 }
  0x5b   : > { %521 = vmatpush3.bf16.msra.mxu0 %v600_v1  ;;  %p674_p10 = scmp.lt.s32.totalorder %s931_s9, %s672_s23  ;;  %p675_p13 = scmp.lt.s32.totalorder %s673_s29, %s667_s27 }
  0x5c   : > { %522 = vmatprep.subr.bf16.mxu0 %v601_v2  ;;  %p670_p8 = pneg %p669_p6 }
  0x5d   : > { %p676_p3 = por %p675_p13, %p674_p10 }
  0x5f   : > { %523 = vmatpush3.bf16.msra.mxu0 %v601_v2  ;;  %p677_p7 = pnand %p676_p3, %p670_p8 }
  0x60   : > { %524 = vmatprep.subr.bf16.mxu0 %v602_v3 }
  0x63   : > { %525 = vmatpush3.bf16.msra.mxu0 %v602_v3 }
  0x64   : > { %526 = vmatprep.subr.bf16.mxu0 %v603_v5 }
  0x67   : > { %527 = vmatpush3.bf16.msra.mxu0 %v603_v5 }
  0x68   : > { %528 = vmatprep.subr.bf16.mxu0 %v604_v6 }
  0x6b   : > { %529 = vmatpush3.bf16.msra.mxu0 %v604_v6 }
  0x6c   : > { %530 = vmatprep.subr.bf16.mxu0 %v605_v7 }
  0x6f   : > { %531 = vmatpush3.bf16.msra.mxu0 %v605_v7 }
  0x70   : > { %532 = vmatprep.subr.bf16.mxu0 %v606_v8 }
  0x73   : > { %533 = vmatpush3.bf16.msra.mxu0 %v606_v8 }
  0x76   : > { %535 = vmatmul.mubr.bf16.vlgmr.msra.gmra.mrb[0].mxu0 %v608_v9 }
 0x149   : > { %v536_v10 = vpop.f32.mrb[0].mxu0 }
 0x14a   : > { %v328_v12 = vpop.f32.mrb[1].mxu0  ;;  %v337_v14 = vadd.f32 %v536_v10, %v471_v11 }
 0x14b   : > { %v537_v13 = vpop.f32.mrb[2].mxu0  ;;  %v329_v17 = vadd.f32 %v471_v11, %v328_v12 }
 0x14c   : > { %v340_v15 = vadd.f32 %v537_v13, %v471_v11  ;;  %v331_v16 = vpop.f32.mrb[3].mxu0 }
 0x14d   : > { %v332_v18 = vadd.f32 %v471_v11, %v331_v16 }
 0x14e   : > { %v505_v19 = vpack.c.bf16 %v340_v15, %v337_v14 }
 0x14f   : > { %v500_v20 = vpack.c.bf16 %v332_v18, %v329_v17 }
 0x150   : > { %507 = vst [vmem:[%s203_s8 + $0x8] sm:$0xff] %v505_v19  }
 0x151   : > { %501 = vst [vmem:[%s203_s8] sm:$0xff] %v500_v20  }
 0x152   : > { %680 = shalt.err (!%p677_p7)
}
 0x153   : > { %s681_s30 = scalar_lea.hbm %s936_s11, 256  ;;  %s685_s10 = scalar_lea.hbm %s983_s3, 512 }
 0x154   : > { %p682_p9 = scmp.ne.s32.totalorder %s936_s11, %s681_s30  ;;  %p686_p5 = scmp.lt.u32.totalorder %s936_s11, %s983_s3 }
 0x155   : > { %p687_p11 = scmp.lt.u32.totalorder %s685_s10, %s681_s30  ;;  %p689_p4 = scmp.lt.u32.totalorder %s681_s30, %s936_s11 }
 0x156   : > { %p683_p1 = pnand %p682_p9, %p860_p12 }
 0x157   : > { %p688_p2 = por %p687_p11, %p686_p5 }
 0x158   : > { %p684_p0 = pneg %p683_p1 }
 0x159   : > { %p690_p6 = por %p689_p4, %p688_p2 }
 0x15b   : > { %p691_p8 = pnand %p690_p6, %p684_p0 }
 0x15d   : > { %694 = shalt.err (!%p691_p8)
}
 0x15e   : > { %s744_s20 = smov 64   ;;  %s745_s8 = smov 4  }
 0x15f   : > { %544 = dma.vmem_to_hbm [thread:$0]  (%p860_p12), %s931_s9, 256, %s936_s11, %s364_s16, %s744_s20, %s744_s20, %s745_s8  }
 0x160 PF: > { %s392_s4 = sand.u32 1, %s725_s12   ;;  %p998_p10 = scmp.ne.s32.totalorder %s988_s19, 0 }
 0x161   : > { %p999_p13 = scmp.ge.s32.totalorder %s737_s15, 2  ;;  %s393_s25 = scalar_lea.sflag [#allocation4], %s392_s4 }
 0x163   : > { %p555_p3 = pnand %p999_p13, %p998_p10 }
 0x165   : > { %720 = dma.done.wait (!%p555_p3), %s393_s25, 256  }
 0x166   : > { %722 = vsyncadd (!%p555_p3), %s393_s25, 4294967040  ;;  %p17_p7 = scmp.ge.s32.totalorder %s822_s24, 4   ;;  %s1000_s12 = smov %s729_s13 }
 0x167   : > { %s1001_s13 = smov %s733_s14  ;;  %s1002_s14 = smov %s856_s17 }
 0x168   : > { %s1003_s15 = smov %s822_s24  ;;  %19 = sbr.rel (!%p17_p7) target bundleno = 6 (0x6), region = 81 }
 0x16f   :  { %398 = vsyncpa [#allocation3], 1 }
 0x170   :  { %400 = vsyncpa [#allocation3 + $0x1], 1 }
 0x171   :  { %401 = vsyncpa [#allocation6], 1 }
 0x172   :  { %402 = vsyncpa [#allocation4], 1 }
 0x173   :  { %404 = vsyncpa [#allocation4 + $0x1], 1 }

</bundles_post_ra>
